<compile_context>
chip_gen: v5e
topology: v5e:2x2
jax: 0.10.0
libtpu: 0.0.40
codegen_flags: <defaults>
</compile_context>

<pallas_src>
import functools
import math

import jax
import jax.numpy as jnp
from jax import lax
from jax.experimental import pallas as pl
from jax.experimental.pallas import tpu as pltpu


def _round_up(x, m):
    return (x + m - 1) // m * m


def _pick_tokens_per_block(n_tok, d_model, itemsize, *, prefer=256,
                           vmem_budget_bytes=12 * 2**20):
    """Tokens per grid step: multiple of 8, preferably dividing n_tok."""
    # ~4 (T, D) slabs live at once on the DMA path:
    #   2 gather-buffer slots + 2 double-buffered output blocks.
    max_t = max(8, vmem_budget_bytes // (4 * d_model * itemsize))
    cap = max(8, min(prefer, (max_t // 8) * 8))
    if n_tok <= cap:
        return _round_up(n_tok, 8)
    # Largest multiple of 8 <= cap that divides n_tok -> no output padding, so
    # the final slice/reshape is a metadata op (no extra HBM pass).
    t = cap
    while t >= 8:
        if n_tok % t == 0:
            return t
        t -= 8
    return cap


def _vmem_limit_bytes(est_vmem):
    """Raise the scoped VMEM limit only if needed; cap generation-aware."""
    if est_vmem <= 16 * 2**20:          # fits the most conservative default scope
        return None
    try:
        cap = int(0.75 * pltpu.get_tpu_info().vmem_capacity_bytes)
    except Exception:                    # best-effort hardware query
        cap = 48 * 2**20
    return int(min(cap, max(32 * 2**20, 2 * est_vmem)))


# ---------------------------------------------------------------------------
# Path A: small vocab -> whole table resident in VMEM, one-hot gather on MXU.
# ---------------------------------------------------------------------------
def _embed_resident_kernel(ids_ref, table_ref, out_ref, *, scale):
    # ids_ref:   (T, 1) int32 token ids for this block (sublane-major).
    # table_ref: (V, D) full embedding table, VMEM-resident (fetched once).
    # out_ref:   (T, D)
    ids = ids_ref[...]                                    # (T, 1)
    tbl = table_ref[...]                                  # (V, D)
    t, v = ids.shape[0], tbl.shape[0]
    iota = lax.broadcasted_iota(jnp.int32, (t, v), 1)
    # Fold sqrt(d_model) into the one-hot values: removes the separate (T, D)
    # VPU multiply and is bit-identical to gather-then-scale in f32.
    # (A bf16 one-hot/table variant would be faster near the size cutoff but
    #  changes numerics vs the f32 nn.Embedding weights, so it is not used.)
    one_hot = jnp.where(ids == iota, scale, 0.0).astype(tbl.dtype)
    out_ref[...] = jnp.dot(one_hot, tbl,
                           preferred_element_type=jnp.float32).astype(out_ref.dtype)


# ---------------------------------------------------------------------------
# Path B: large vocab -> table stays in HBM; chunked, cross-step double-
# buffered manual row-DMA gather driven by scalar-prefetched ids in SMEM.
# ---------------------------------------------------------------------------
def _embed_dma_kernel(ids_smem, table_hbm, out_ref, gather_buf, sem, *,
                      scale, tokens_per_block, rows_per_chunk, n_chunks):
    # ids_smem:   (n_pad,) int32 token ids, scalar-prefetched into SMEM.
    # table_hbm:  (V, D) embedding table left in HBM (memory_space=pl.ANY).
    # out_ref:    (T, D) output block in VMEM (auto-pipelined writeback).
    # gather_buf: (2, T, D) VMEM scratch; slot = inner_id % 2 holds this block.
    # sem:        (C, 2) DMA semaphores, one per (chunk, slot).
    T, R, C = tokens_per_block, rows_per_chunk, n_chunks
    i = pl.program_id(1)
    n_inner = pl.num_programs(1)
    blk = pl.program_id(0) * n_inner + i
    slot = i % 2

    def row_copy(block, row, buf_slot, chunk):
        tok = ids_smem[block * T + row]
        return pltpu.make_async_copy(
            table_hbm.at[pl.ds(tok, 1), :],
            gather_buf.at[buf_slot, pl.ds(row, 1), :],
            sem.at[chunk, buf_slot],
        )

    def issue_chunk(block, chunk, buf_slot):
        for r in range(R):                 # static, fully unrolled issue loop
            row_copy(block, chunk * R + r, buf_slot, chunk).start()

    # Prologue: the first block of this inner sequence was not prefetched by a
    # previous step -> issue all of its chunks now (slot == 0 when i == 0).
    @pl.when(i == 0)
    def _():
        for c in range(C):
            issue_chunk(blk, c, slot)

    for c in range(C):
        # Retire this chunk's row copies using their real descriptors
        # (ids re-read from SMEM; no placeholder-source trick).
        for r in range(R):
            row_copy(blk, c * R + r, slot, c).wait()

        # Cross-step pipeline: prefetch the same chunk of the *next* block
        # into the other buffer slot while the remaining chunks of this block
        # are still in flight and while this chunk is scaled + stored.
        @pl.when(i + 1 < n_inner)
        def _(c=c):
            issue_chunk(blk + 1, c, 1 - slot)

        rows = gather_buf[slot, pl.ds(c * R, R), :]
        out_ref[pl.ds(c * R, R), :] = (rows * scale).astype(out_ref.dtype)


def input_embedding(ids, table, *, tokens_per_block=None, force_dma_path=False):
    """Pallas equivalent of InputEmbedding.forward: table[ids] * sqrt(D)."""
    B, S = ids.shape
    V, D = table.shape
    scale = math.sqrt(D)
    n_tok = B * S
    itemsize = jnp.dtype(table.dtype).itemsize

    # Clip guards the gather against out-of-range ids (PyTorch nn.Embedding
    # would raise; here OOB ids are clamped to valid rows instead of faulting).
    ids_flat = jnp.clip(ids.reshape(n_tok).astype(jnp.int32), 0, V - 1)

    T = tokens_per_block or _pick_tokens_per_block(n_tok, D, itemsize)
    n_pad = _round_up(n_tok, T)
    ids_pad = ids_flat if n_pad == n_tok else jnp.pad(ids_flat, (0, n_pad - n_tok))
    n_blocks = n_pad // T

    table_bytes = V * D * itemsize
    use_resident = (not force_dma_path) and table_bytes <= 4 * 2**20 and V <= 1024

    if use_resident:
        est_vmem = 2 * table_bytes + 2 * T * D * itemsize + T * V * 4 + 2 * T * 4
        cost = pl.CostEstimate(
            flops=2 * n_pad * V * D, transcendentals=0,
            bytes_accessed=n_pad * 4 + table_bytes + n_pad * D * itemsize)
        kernel = functools.partial(_embed_resident_kernel, scale=scale)
        grid_spec = pltpu.PrefetchScalarGridSpec(
            num_scalar_prefetch=0,
            grid=(n_blocks,),
            in_specs=[
                pl.BlockSpec((T, 1), lambda i: (i, 0)),   # this block's ids
                pl.BlockSpec((V, D), lambda i: (0, 0)),   # table: fetched once
            ],
            out_specs=pl.BlockSpec((T, D), lambda i: (i, 0)),
        )
        dim_sem = ("parallel",)
        args = (ids_pad.reshape(n_pad, 1), table)
    else:
        n_chunks = max(1, min(8, T // 8))
        rows_per_chunk = T // n_chunks
        # Outer axis -> megacore (v7x 2 TCs); inner axis carries the cross-step
        # DMA pipeline through scratch, so it must stay "arbitrary".  Only use
        # an outer split when each inner sequence still has >= 2 blocks.
        n_outer = 2 if (n_blocks % 2 == 0 and n_blocks >= 4) else 1
        n_inner = n_blocks // n_outer
        est_vmem = 4 * T * D * itemsize
        cost = pl.CostEstimate(
            flops=n_pad * D, transcendentals=0,
            bytes_accessed=n_pad * 4 + 2 * n_pad * D * itemsize)
        kernel = functools.partial(
            _embed_dma_kernel, scale=scale, tokens_per_block=T,
            rows_per_chunk=rows_per_chunk, n_chunks=n_chunks)
        grid_spec = pltpu.PrefetchScalarGridSpec(
            num_scalar_prefetch=1,                        # ids -> SMEM
            grid=(n_outer, n_inner),
            in_specs=[pl.BlockSpec(memory_space=pl.ANY)], # table stays in HBM
            out_specs=pl.BlockSpec(
                (T, D), lambda o, i, ids_sm: (o * n_inner + i, 0)),
            scratch_shapes=[
                pltpu.VMEM((2, T, D), table.dtype),
                pltpu.SemaphoreType.DMA((n_chunks, 2)),
            ],
        )
        dim_sem = ("parallel", "arbitrary")
        args = (ids_pad, table)
        # TODO(synk): for very long B*S (>~64K tokens) the scalar-prefetched id
        # array should be chunked across multiple pallas_calls (SMEM capacity).

    compiler_kwargs = dict(dimension_semantics=dim_sem)
    vlim = _vmem_limit_bytes(est_vmem)
    if vlim is not None:
        compiler_kwargs["vmem_limit_bytes"] = vlim

    out_pad = pl.pallas_call(
        kernel,
        out_shape=jax.ShapeDtypeStruct((n_pad, D), table.dtype),
        grid_spec=grid_spec,
        compiler_params=pltpu.CompilerParams(**compiler_kwargs),
        cost_estimate=cost,
    )(*args)

    out = out_pad if n_pad == n_tok else out_pad[:n_tok]
    return out.reshape(B, S, D)


if __name__ == "__main__":
    # Small, deterministic example shapes consistent with the module.
    d_model = 128
    vocab_size = 64
    batch, seq = 2, 8

    key = jax.random.PRNGKey(0)
    k_table, k_ids = jax.random.split(key)

    # nn.Embedding weights are N(0, 1) by default.
    table = jax.random.normal(k_table, (vocab_size, d_model), dtype=jnp.float32)
    ids = jax.random.randint(k_ids, (batch, seq), 0, vocab_size, dtype=jnp.int32)

    ref = jnp.take(table, ids, axis=0) * math.sqrt(d_model)

    # Fast path: small vocab -> VMEM-resident table + scaled one-hot MXU gather.
    out = jax.block_until_ready(input_embedding(ids, table))
    assert out.shape == (batch, seq, d_model)
    assert jnp.allclose(out, ref, atol=1e-5, rtol=1e-5)

    # Large-vocab path (forced on the small example): table stays in HBM, rows
    # gathered via chunked manual DMAs (single block -> intra-block chunking).
    out_dma = jax.block_until_ready(
        input_embedding(ids, table, force_dma_path=True))
    assert jnp.allclose(out_dma, ref, atol=1e-5, rtol=1e-5)

    # Also exercise the cross-step double-buffered pipeline (n_inner > 1):
    # 2 blocks of 8 tokens each.
    out_dma2 = jax.block_until_ready(
        input_embedding(ids, table, tokens_per_block=8, force_dma_path=True))
    assert jnp.allclose(out_dma2, ref, atol=1e-5, rtol=1e-5)

    print("KERNEL_OK")
</pallas_src>

<mosaic_0001>
module attributes {stable_mosaic.version = 11 : i64} {
  func.func @_embed_resident_kernel(%arg0: i32, %arg1: memref<16x1xi32, #tpu.memory_space<vmem>>, %arg2: memref<64x128xf32, #tpu.memory_space<vmem>>, %arg3: memref<16x128xf32, #tpu.memory_space<vmem>>) attributes {dimension_semantics = [#tpu.dimension_semantics<parallel>], iteration_bounds = array<i64: 1>, scalar_prefetch = 0 : i64, scratch_operands = 0 : i64, tpu.core_type = #tpu.core_type<tc>, window_params = [{transform_indices = @transform_0, window_bounds = array<i64: 16, 1>}, {pipeline_mode = #tpu.pipeline_mode<synchronous>, transform_indices = @transform_1, window_bounds = array<i64: 64, 128>}, {transform_indices = @transform_2, window_bounds = array<i64: 16, 128>}]} {
    %c0 = arith.constant 0 : index
    %c0_0 = arith.constant 0 : index
    %0 = vector.load %arg1[%c0, %c0_0] : memref<16x1xi32, #tpu.memory_space<vmem>>, vector<16x1xi32>
    %c0_1 = arith.constant 0 : index
    %c0_2 = arith.constant 0 : index
    %1 = vector.load %arg2[%c0_1, %c0_2] : memref<64x128xf32, #tpu.memory_space<vmem>>, vector<64x128xf32>
    %2 = tpu.iota {dimensions = array<i32: 1>} : vector<16x64xi32>
    %3 = vector.broadcast %0 : vector<16x1xi32> to vector<16x64xi32>
    %4 = arith.cmpi eq, %3, %2 : vector<16x64xi32>
    %cst = arith.constant 11.3137083 : f32
    %cst_3 = arith.constant 0.000000e+00 : f32
    %5 = vector.broadcast %cst : f32 to vector<16x64xf32>
    %6 = vector.broadcast %cst_3 : f32 to vector<16x64xf32>
    %7 = arith.select %4, %5, %6 : vector<16x64xi1>, vector<16x64xf32>
    %cst_4 = arith.constant dense<0.000000e+00> : vector<16x128xf32>
    %8 = tpu.matmul %7, %1, %cst_4 {dimension_numbers = #tpu.dot_dimension_numbers<[1], [0], [0], [1], [0, 0, 1, 1], [], []>} : vector<16x64xf32>, vector<64x128xf32>, vector<16x128xf32> -> vector<16x128xf32>
    %c0_5 = arith.constant 0 : index
    %c0_6 = arith.constant 0 : index
    %9 = vector.load %arg3[%c0_5, %c0_6] : memref<16x128xf32, #tpu.memory_space<vmem>>, vector<16x128xf32>
    tpu.vector_store %arg3[%c0_5, %c0_6], %8 {strides = array<i32>} : memref<16x128xf32, #tpu.memory_space<vmem>>, vector<16x128xf32>,
    return
  }
  func.func @transform_0(%arg0: i32) -> (i32, i32) {
    %c0_i32 = arith.constant 0 : i32
    %c0_i32_0 = arith.constant 0 : i32
    return %arg0, %c0_i32 : i32, i32
  }
  func.func @transform_1(%arg0: i32) -> (i32, i32) {
    %c0_i32 = arith.constant 0 : i32
    %c0_i32_0 = arith.constant 0 : i32
    %c0_i32_1 = arith.constant 0 : i32
    return %c0_i32, %c0_i32_0 : i32, i32
  }
  func.func @transform_2(%arg0: i32) -> (i32, i32) {
    %c0_i32 = arith.constant 0 : i32
    %c0_i32_0 = arith.constant 0 : i32
    return %arg0, %c0_i32 : i32, i32
  }
}

</mosaic_0001>

<bundles_post_ra>
// kernel: tpu_custom_call.1
= control target key start
LH: loop header
LB: loop body
LE: loop exit
PB: predicated region body
PF: predicated region fallthrough
CT: control target
= control target key end

     0   :  { %7 = vsyncpa [#allocation3], 0  ;;  %s209_s0 = inlined_call_operand.vmem [shape: s32[16,1], index: 0, kind: input, shape index: {}]   ;;  %s210_s1 = inlined_call_operand.hbm [shape: f32[64,128], index: 1, kind: input, shape index: {}]   ;;  %s211_s2 = inlined_call_operand.hbm [shape: f32[16,128], index: 2, kind: output, shape index: {}]  }
   0x1   :  { %8 = vsyncpa [#allocation4], 0  ;;  %s15_s11 = sshll.u32 %s210_s1, 4  ;;  %s170_s12 = smov [#allocation2]   ;;  %s16_s11 = int_to_ptr.hbm [resolvable:$true] %s15_s11 }
   0x2   :  { %s17_s13 = sshll.u32 %s170_s12, 4  ;;  %s171_s14 = smov 128   ;;  %s18_s13 = int_to_ptr.vmem [resolvable:$true] %s17_s13 }
   0x3   :  { %s172_s15 = smov 8  }
   0x4   :  { %23 = dma.hbm_to_vmem [thread:$0]  %s16_s11, 1024, %s18_s13, [#allocation3], %s171_s14, %s171_s14, %s172_s15  }
   0x5   :  { %166 = dma.done.wait [#allocation3], 1024  }
   0x6   :  { %167 = vsyncadd [#allocation3], 4294966272  ;;  %v173_v0 = vmov 0   ;;  %v28_v1 = vld [vmem:[%s209_s0] sm:$0xff]  ;;  %v37_v2 = vld [vmem:[#allocation2 + $0x38] sm:$0xff]  ;;  %v38_v11 = vlaneseq  ;;  %vm50_vm0 = vcmask 523264  }
   0x7   :  { %117 = vset.pattern.permute.xlu0 %v173_v0  ;;  %65 = vmatpush.msra.mxu0 %v37_v2  ;;  %v36_v3 = vld [vmem:[#allocation2 + $0x30] sm:$0xff]  ;;  %v35_v4 = vld [vmem:[#allocation2 + $0x28] sm:$0xff]  ;;  %v34_v5 = vld [vmem:[#allocation2 + $0x20] sm:$0xff]  ;;  %v174_v14 = vmov 0.0   ;;  %s88_s22 = sshll.u32 %s211_s2, 4  ;;  %s89_s22 = int_to_ptr.hbm [resolvable:$true] %s88_s22 }
   0x8   :  { %41 = vperm.xlu0 %117, %v28_v1   ;;  %103 = vmatpush.msra.mxu1 %v37_v2  ;;  %v29_v6 = vld [vmem:[%s209_s0 + $0x8] sm:$0xff]  ;;  %v33_v7 = vld [vmem:[#allocation2 + $0x18] sm:$0xff]  ;;  %v32_v8 = vld [vmem:[#allocation2 + $0x10] sm:$0xff]  ;;  %v39_v12 = vand.u32 127, %v38_v11  ;;  %s175_s0 = smov [#allocation5]  }
   0x9   :  { %66 = vmatpush.msra.mxu0 %v36_v3  ;;  %v31_v9 = vld [vmem:[#allocation2 + $0x8] sm:$0xff]  ;;  %v30_v10 = vld [vmem:[#allocation2] sm:$0xff]  ;;  %s86_s19 = sshll.u32 %s175_s0, 4  ;;  %s87_s19 = int_to_ptr.vmem [resolvable:$true] %s86_s19 }
   0xa   :  { %104 = vmatpush.msra.mxu1 %v36_v3 }
   0xb   :  { %67 = vmatpush.msra.mxu0 %v35_v4 }
   0xc   :  { %105 = vmatpush.msra.mxu1 %v35_v4 }
   0xd   :  { %68 = vmatpush.msra.mxu0 %v34_v5 }
   0xe   :  { %106 = vmatpush.msra.mxu1 %v34_v5 }
   0xf   :  { %69 = vmatpush.msra.mxu0 %v33_v7 }
  0x10   :  { %44 = vperm.xlu0 %117, %v29_v6   ;;  %107 = vmatpush.msra.mxu1 %v33_v7 }
  0x11   :  { %70 = vmatpush.msra.mxu0 %v32_v8 }
  0x12   :  { %108 = vmatpush.msra.mxu1 %v32_v8 }
  0x13   :  { %71 = vmatpush.msra.mxu0 %v31_v9 }
  0x14   :  { %109 = vmatpush.msra.mxu1 %v31_v9 }
  0x15   :  { %72 = vmatpush.msra.mxu0 %v30_v10 }
  0x16   :  { %110 = vmatpush.msra.mxu1 %v30_v10 }
  0x7a   :  { %v42_v13 = vpop.permute.xlu0 %41 }
  0x7b   :  { %vm46_vm1 = vcmp.eq.s32.totalorder %v42_v13, %v39_v12 }
  0x7c   :  { %v48_v15 = vsel %vm46_vm1, 11.313708, %v174_v14 }
  0x7d   :  { %101 = vmatmul.msk.f32.vlgmr.msra.gmra.mxu0 %vm50_vm0, %v48_v15 }
  0x82   :  { %v45_v16 = vpop.permute.xlu0 %44 }
  0x83   :  { %vm47_vm2 = vcmp.eq.s32.totalorder %v45_v16, %v39_v12 }
  0x84   :  { %v49_v17 = vsel %vm47_vm2, 11.313708, %v174_v14 }
  0x85   :  { %102 = vmatmul.msk.f32.vlgmr.msra.gmra.mxu1 %vm50_vm0, %v49_v17 }
  0xfa   :  { %v74_v18 = vpop.f32.mrf.mxu0 }
  0xfb   :  { %80 = vst [vmem:[#allocation5] sm:$0xff] %v74_v18 }
 0x102   :  { %v77_v19 = vpop.f32.mrf.mxu1 }
 0x103   :  { %81 = vst [vmem:[#allocation5 + $0x8] sm:$0xff] %v77_v19 }
 0x104   :  { %94 = dma.vmem_to_hbm [thread:$0]  %s87_s19, 256, %s89_s22, [#allocation4], %s171_s14, %s171_s14, %s172_s15  }
 0x105   :  { %168 = dma.done.wait [#allocation4], 256  }
 0x106   :  { %169 = vsyncadd [#allocation4], 4294967040 }
 0x107   :  { %99 = vsyncpa [#allocation3], 1 }
 0x108   :  { %100 = vsyncpa [#allocation4], 1 }

</bundles_post_ra>
